<compile_context>
chip_gen: v7x
topology: tpu7x:2x2x1
jax: 0.10.0
libtpu: 0.0.40
codegen_flags: <defaults>
</compile_context>

<pallas_src>
import math

import jax
import jax.numpy as jnp
from jax.experimental import pallas as pl
from jax.experimental.pallas import tpu as pltpu

_LANE = 128


def _broadcast_query_kernel(q_ref, o_ref):
    # q_ref: (1, TC)  resident query (column) slab
    # o_ref: (TB, TC) lane-dense output tile for this (row, col) grid step
    o_ref[...] = jnp.broadcast_to(q_ref[...], o_ref.shape)


def _vmem_capacity_bytes() -> int:
    """Best-effort per-core VMEM capacity; conservative fallback (v7x-safe)."""
    try:
        return int(pltpu.get_tpu_info().vmem_capacity_bytes)
    except Exception:
        return 64 << 20


def query_forward(query_param: jax.Array, batch_size: int,
                  *, force_pallas: bool = False) -> jax.Array:
    """Replicate `query_param` (1, S, E) along batch -> (batch_size, S, E)."""
    _, seq_len, emb_size = query_param.shape
    se = seq_len * emb_size
    dtype = query_param.dtype
    itemsize = jnp.dtype(dtype).itemsize
    total_out_bytes = batch_size * se * itemsize

    # ---- Small-output fast path: fixed pallas_call overhead dominates. ----
    if not force_pallas and total_out_bytes <= (1 << 20):
        return jnp.broadcast_to(query_param, (batch_size, seq_len, emb_size))

    # ---- Lane-dense folding: make the output's last dim a multiple of 128 ----
    # Fold k batch rows into one lane row when S*E is not already 128-aligned,
    # so stores are full unmasked vst's instead of masked partials.
    k = 1
    if se % _LANE != 0:
        need = _LANE // math.gcd(se, _LANE)
        if need > 1 and batch_size % need == 0 and need * se * itemsize <= (4 << 20):
            k = need

    rows = batch_size // k
    row_elems = k * se
    row_bytes = row_elems * itemsize

    # Dtype-native sublane multiple (sub-32-bit dtypes pack along sublanes).
    sublane = {4: 8, 2: 16, 1: 32}.get(itemsize, 8)

    # ---- Generation-aware buffer sizing ----
    vmem_cap = _vmem_capacity_bytes()
    if vmem_cap >= (96 << 20):
        target_buf_bytes = 32 << 20       # v5e / v6e: 128 MiB physical VMEM
    else:
        target_buf_bytes = 12 << 20       # v7x: 64 MiB per TensorCore

    # ---- Tile sizing ----
    if row_bytes <= target_buf_bytes:
        tc = row_elems                                  # full lane width
        tb = min(rows, max(1, target_buf_bytes // row_bytes))
        if tb < rows:
            tb = max(sublane, (tb // sublane) * sublane)
            tb = min(tb, rows)
    else:
        # A single row exceeds the buffer budget: tile the lane axis too.
        tb = min(rows, sublane)
        tc = max(_LANE, (target_buf_bytes // (tb * itemsize)) // _LANE * _LANE)
        tc = min(tc, row_elems)

    num_col_tiles = pl.cdiv(row_elems, tc)

    # Ensure >= 2 batch tiles when worth splitting, so v7x's two TensorCores
    # both stream output under the "parallel" semantics (no-op on v5e/v6e).
    if (num_col_tiles == 1 and tb == rows and rows > 1
            and rows * row_bytes > (4 << 20)):
        half = -(-rows // 2)
        half = -(-half // sublane) * sublane
        if half < rows:
            tb = half

    num_row_tiles = pl.cdiv(rows, tb)

    # ---- Scoped VMEM limit from the actual footprint (not physical max) ----
    out_buf_bytes = 2 * tb * tc * itemsize          # double-buffered output
    in_buf_bytes = 2 * tc * itemsize                # double-buffered input slab
    vmem_limit = int(min(vmem_cap,
                         max(out_buf_bytes + in_buf_bytes + (2 << 20),
                             16 << 20)))

    # ---- Build the lane-dense input slab (k concatenated query copies) ----
    q2d = query_param.reshape(1, se)
    q_slab = jnp.tile(q2d, (1, k)) if k > 1 else q2d    # (1, row_elems)

    out2d = pl.pallas_call(
        _broadcast_query_kernel,
        out_shape=jax.ShapeDtypeStruct((rows, row_elems), dtype),
        grid_spec=pltpu.PrefetchScalarGridSpec(
            num_scalar_prefetch=0,
            grid=(num_row_tiles, num_col_tiles),
            in_specs=[
                # Constant row index: the query slab stays resident; only the
                # (tiny) column slice changes when the lane axis is tiled.
                pl.BlockSpec((1, tc), lambda b, c: (0, c)),
            ],
            out_specs=pl.BlockSpec((tb, tc), lambda b, c: (b, c)),
        ),
        compiler_params=pltpu.CompilerParams(
            # Every block is an independent write: both axes parallel, letting
            # v7x shard tiles across its 2 TensorCores.
            dimension_semantics=("parallel", "parallel"),
            vmem_limit_bytes=vmem_limit,
        ),
        cost_estimate=pl.CostEstimate(
            flops=0,
            transcendentals=0,
            bytes_accessed=total_out_bytes + row_elems * itemsize,
        ),
    )(q_slab)

    # (rows, k*se) row-major == (batch_size, se) row-major -> free reshape.
    return out2d.reshape(batch_size, seq_len, emb_size)


class Query:
    """JAX/Pallas counterpart of the PyTorch Query module."""

    def __init__(self, seq_len: int, emb_size: int, key: jax.Array):
        # torch.randn(1, seq_len, emb_size) analogue, deterministic via PRNGKey.
        self.query = jax.random.normal(
            key, (1, seq_len, emb_size), dtype=jnp.float32
        )

    def __call__(self, batch_size: int, *, force_pallas: bool = False) -> jax.Array:
        return query_forward(self.query, batch_size, force_pallas=force_pallas)


if __name__ == "__main__":
    key = jax.random.PRNGKey(0)

    # --- Test 1: small module shape, Pallas path forced (se = 256, 128-aligned)
    seq_len, emb_size, batch_size = 8, 32, 2
    module = Query(seq_len, emb_size, key)

    out = module(batch_size, force_pallas=True)
    out = jax.block_until_ready(out)
    ref = jnp.concatenate([module.query] * batch_size, axis=0)
    assert out.shape == (batch_size, seq_len, emb_size), out.shape
    assert out.dtype == module.query.dtype
    assert bool(jnp.array_equal(out, ref))

    # --- Test 2: fast path (tiny output, no pallas_call) matches reference
    out_fast = jax.block_until_ready(module(batch_size))
    assert bool(jnp.array_equal(out_fast, ref))

    # --- Test 3: non-128-aligned S*E exercises the lane-fold path (se = 96)
    key2 = jax.random.PRNGKey(0)
    module2 = Query(4, 24, key2)
    b2 = 16
    out2 = jax.block_until_ready(module2(b2, force_pallas=True))
    ref2 = jnp.concatenate([module2.query] * b2, axis=0)
    assert out2.shape == (b2, 4, 24)
    assert bool(jnp.array_equal(out2, ref2))

    print("KERNEL_OK")
</pallas_src>

<mosaic_0001>
module attributes {stable_mosaic.version = 11 : i64} {
  func.func @_broadcast_query_kernel(%arg0: i32, %arg1: i32, %arg2: memref<1x256xf32, #tpu.memory_space<vmem>>, %arg3: memref<2x256xf32, #tpu.memory_space<vmem>>) attributes {dimension_semantics = [#tpu.dimension_semantics<parallel>, #tpu.dimension_semantics<parallel>], iteration_bounds = array<i64: 1, 1>, scalar_prefetch = 0 : i64, scratch_operands = 0 : i64, tpu.core_type = #tpu.core_type<tc>, window_params = [{transform_indices = @transform_0, window_bounds = array<i64: 1, 256>}, {transform_indices = @transform_1, window_bounds = array<i64: 2, 256>}]} {
    %c0 = arith.constant 0 : index
    %c0_0 = arith.constant 0 : index
    %0 = vector.load %arg2[%c0, %c0_0] : memref<1x256xf32, #tpu.memory_space<vmem>>, vector<1x256xf32>
    %1 = vector.shape_cast %0 : vector<1x256xf32> to vector<1x256xf32>
    %2 = vector.broadcast %1 : vector<1x256xf32> to vector<2x256xf32>
    %c0_1 = arith.constant 0 : index
    %c0_2 = arith.constant 0 : index
    %3 = vector.load %arg3[%c0_1, %c0_2] : memref<2x256xf32, #tpu.memory_space<vmem>>, vector<2x256xf32>
    tpu.vector_store %arg3[%c0_1, %c0_2], %2 {strides = array<i32>} : memref<2x256xf32, #tpu.memory_space<vmem>>, vector<2x256xf32>,
    return
  }
  func.func @transform_0(%arg0: i32, %arg1: i32) -> (i32, i32) {
    %c0_i32 = arith.constant 0 : i32
    %c0_i32_0 = arith.constant 0 : i32
    return %c0_i32, %arg1 : i32, i32
  }
  func.func @transform_1(%arg0: i32, %arg1: i32) -> (i32, i32) {
    %c0_i32 = arith.constant 0 : i32
    return %arg0, %arg1 : i32, i32
  }
}

</mosaic_0001>

<bundles_post_ra>
// kernel: tpu_custom_call.1
= control target key start
LH: loop header
LB: loop body
LE: loop exit
PB: predicated region body
PF: predicated region fallthrough
CT: control target
= control target key end

     0   :  { %6 = vsyncpa [#allocation3], 0  ;;  %s143_s0 = inlined_call_operand.hbm [shape: f32[1,256], index: 0, kind: input, shape index: {}]   ;;  %s144_s1 = inlined_call_operand.hbm [shape: f32[2,256], index: 1, kind: output, shape index: {}]  }
   0x1   :  { %7 = vsyncpa [#allocation4], 0  ;;  %s107_s6 = smov [#allocation2]   ;;  %s59_s10 = scalar_lea.hbm %s143_s0, 32 }
   0x2   :  { %s14_s7 = sshll.u32 %s107_s6, 4  ;;  %p60_p0 = scmp.ne.s32.totalorder %s143_s0, %s59_s10  ;;  %s15_s7 = int_to_ptr.vmem [resolvable:$true] %s14_s7 }
   0x3   :  { %p63_p1 = scmp.lt.u32.totalorder %s59_s10, %s143_s0 }
   0x5   :  { %p65_p2 = pnand %p63_p1, %p60_p0 }
   0x7   :  { %68 = shalt.err (!%p65_p2)
}
   0x8   :  { %s69_s15 = scalar_lea.vmem %s15_s7, 32  ;;  %p74_p4 = scmp.lt.s32.totalorder %s15_s7, %s15_s7 }
   0x9   :  { %p70_p3 = scmp.ne.s32.totalorder %s15_s7, %s69_s15  ;;  %p75_p5 = scmp.lt.s32.totalorder %s69_s15, %s69_s15 }
   0xb   :  { %p76_p6 = por %p75_p5, %p74_p4 }
   0xd   :  { %p77_p7 = pnand %p76_p6, %p70_p3 }
   0xf   :  { %80 = shalt.err (!%p77_p7)
}
  0x10   :  { %17 = dma.hbm_to_vmem [thread:$0]  %s143_s0, 32, %s15_s7, [#allocation3]  }
  0x11   :  { %103 = dma.done.wait [#allocation3], 32  }
  0x12   :  { %104 = vsyncadd [#allocation3], 4294967264  ;;  %v23_v0 = vlaneseq  ;;  %v21_v4 = vld [vmem:[#allocation2] sm:$0x3]  ;;  %s108_s18 = smov [#allocation5]  }
  0x13   :  { %s47_s19 = sshll.u32 %s108_s18, 4  ;;  %s48_s19 = int_to_ptr.vmem [resolvable:$true] %s47_s19 }
  0x14   :  { %v24_v1 = vshrl.u32 %v23_v0, 7  ;;  %s81_s20 = scalar_lea.vmem %s48_s19, 64  ;;  %p86_p9 = scmp.lt.s32.totalorder %s48_s19, %s48_s19 }
  0x15   :  { %p82_p8 = scmp.ne.s32.totalorder %s48_s19, %s81_s20  ;;  %p87_p10 = scmp.lt.s32.totalorder %s81_s20, %s81_s20 }
  0x16   :  { %v25_v2 = vsub.s32 0, %v24_v1  ;;  %v29_v3 = vsub.s32 1, %v24_v1 }
  0x17   :  { %p88_p11 = por %p87_p10, %p86_p9 }
  0x18   :  { %v26_v5 = vrot.slane %v21_v4, %v25_v2  ;;  %v30_v6 = vrot.slane %v21_v4, %v29_v3 }
  0x19   :  { %p89_p12 = pnand %p88_p11, %p82_p8 }
  0x1a   :  { %v31_v7 = vcombine.low %v26_v5, %v30_v6 }
  0x1c   :  { %56 = vst.sshfl [vmem:[#allocation5] sm:$0x33 pattern:$0x76325410] %v31_v7 }
  0x1d   :  { %92 = shalt.err (!%p89_p12)
}
  0x1e   :  { %s93_s22 = scalar_lea.hbm %s144_s1, 64 }
  0x1f   :  { %p94_p13 = scmp.ne.s32.totalorder %s144_s1, %s93_s22  ;;  %p97_p0 = scmp.lt.u32.totalorder %s93_s22, %s144_s1 }
  0x21   :  { %p99_p1 = pnand %p97_p0, %p94_p13 }
  0x23   :  { %102 = shalt.err (!%p99_p1)
}
  0x24   :  { %50 = dma.vmem_to_hbm [thread:$0]  %s48_s19, 64, %s144_s1, [#allocation4]  }
  0x25   :  { %105 = dma.done.wait [#allocation4], 64  }
  0x26   :  { %106 = vsyncadd [#allocation4], 4294967232 }
  0x27   :  { %54 = vsyncpa [#allocation3], 1 }
  0x28   :  { %55 = vsyncpa [#allocation4], 1 }

</bundles_post_ra>
